<compile_context>
chip_gen: v7x
topology: tpu7x:2x2x1
jax: 0.10.0
libtpu: 0.0.40
codegen_flags: <defaults>
</compile_context>

<pallas_src>
import math

import jax
import jax.numpy as jnp
from jax.experimental import pallas as pl
from jax.experimental.pallas import tpu as pltpu


def _copy_kernel(x_ref, o_ref):
    # Pure lane-dense tile copy: straight vld/vst stream, no relayout work.
    o_ref[...] = x_ref[...]


def _sublane_unit(dtype) -> int:
    """Dtype-aware sublane packing unit (rows per packed vreg)."""
    itemsize = jnp.dtype(dtype).itemsize
    if itemsize >= 4:
        return 8
    if itemsize == 2:
        return 16
    return 32


_TILE_BUDGET_BYTES = 4 * 1024 * 1024   # per-tile cap (<= ~4x with dbl-buffer)
_VMEM_LIMIT_BYTES = 32 * 1024 * 1024   # explicit; safe on v5e/v6e/v7x
_MAX_LANE_TILE = 32768                 # long contiguous DMA bursts


def _lane_dense_copy(x2: jax.Array) -> jax.Array:
    """Tiled identity copy of a 2D array with lane-dense, VMEM-safe blocks."""
    r, c = x2.shape
    itemsize = jnp.dtype(x2.dtype).itemsize

    # Sublane tile: capped at the packing unit; spend the budget on lanes.
    unit = _sublane_unit(x2.dtype)
    tb = r if r <= unit else unit

    # Lane tile: large multiple of 128 within the per-tile budget.  Ragged
    # edges (c % tf != 0, r % tb != 0) become masked edge blocks via cdiv.
    if c <= 128:
        tf = c  # full extent (tiny / lane-starved leftover case)
    else:
        tf = min(c, _MAX_LANE_TILE, _TILE_BUDGET_BYTES // max(1, tb * itemsize))
        tf = max(128, (tf // 128) * 128)

    grid = (pl.cdiv(r, tb), pl.cdiv(c, tf))

    return pl.pallas_call(
        _copy_kernel,
        out_shape=jax.ShapeDtypeStruct((r, c), x2.dtype),
        grid=grid,
        in_specs=[pl.BlockSpec((tb, tf), lambda i, j: (i, j))],
        out_specs=pl.BlockSpec((tb, tf), lambda i, j: (i, j)),
        cost_estimate=pl.CostEstimate(
            flops=0, transcendentals=0, bytes_accessed=2 * r * c * itemsize),
        compiler_params=pltpu.CompilerParams(
            dimension_semantics=("parallel", "parallel"),
            vmem_limit_bytes=_VMEM_LIMIT_BYTES,
        ),
    )(x2)


def _flatten_impl(x: jax.Array) -> jax.Array:
    """Equivalent of PyTorch `input_tensor.view(input_tensor.size(0), -1)`."""
    b = x.shape[0]
    flat = math.prod(x.shape[1:]) if x.ndim > 1 else 1

    # Free metadata reshape in the wrapper; kernel only sees a 2D slab.
    x2 = jnp.reshape(x, (b, flat))

    if flat >= 128 or b == 1:
        return _lane_dense_copy(x2)

    # Lane-starved output (flat < 128): fold batch into the lane axis so the
    # copy stays lane-dense, then restore the (b, flat) shape (both reshapes
    # are metadata-only for contiguous row-major data).
    y_folded = _lane_dense_copy(jnp.reshape(x2, (1, b * flat)))
    return jnp.reshape(y_folded, (b, flat))


# jit so the wrapper-side reshapes and the pallas_call live in one computation
# (the reshapes stay zero-cost metadata changes).
flatten_pallas = jax.jit(_flatten_impl)


if __name__ == "__main__":
    key = jax.random.PRNGKey(0)

    # Primary case: small NCHW input consistent with a conv-backbone feature map.
    x = jax.random.normal(key, (2, 4, 16, 16), dtype=jnp.float32)
    y = flatten_pallas(x)
    jax.block_until_ready(y)
    assert y.shape == (2, 4 * 16 * 16), y.shape
    assert y.dtype == x.dtype
    assert jnp.array_equal(y, x.reshape(x.shape[0], -1))

    # Lane-starved case (flat < 128): exercises the fold-into-lanes path.
    k1, k2 = jax.random.split(key)
    xs = jax.random.normal(k1, (2, 4, 4), dtype=jnp.float32)
    ys = flatten_pallas(xs)
    jax.block_until_ready(ys)
    assert ys.shape == (2, 16)
    assert jnp.array_equal(ys, xs.reshape(2, -1))

    # Ragged case (flat % 128 != 0): exercises the masked cdiv edge block.
    xr = jax.random.normal(k2, (2, 3, 50, 3), dtype=jnp.float32)
    yr = flatten_pallas(xr)
    jax.block_until_ready(yr)
    assert yr.shape == (2, 450)
    assert jnp.array_equal(yr, xr.reshape(2, -1))

    print("KERNEL_OK")
</pallas_src>

<mosaic_0001>
module attributes {stable_mosaic.version = 11 : i64} {
  func.func @_copy_kernel(%arg0: i32, %arg1: i32, %arg2: memref<2x1024xf32, #tpu.memory_space<vmem>>, %arg3: memref<2x1024xf32, #tpu.memory_space<vmem>>) attributes {dimension_semantics = [#tpu.dimension_semantics<parallel>, #tpu.dimension_semantics<parallel>], iteration_bounds = array<i64: 1, 1>, scalar_prefetch = 0 : i64, scratch_operands = 0 : i64, tpu.core_type = #tpu.core_type<tc>, window_params = [{transform_indices = @transform_0, window_bounds = array<i64: 2, 1024>}, {transform_indices = @transform_1, window_bounds = array<i64: 2, 1024>}]} {
    %c0 = arith.constant 0 : index
    %c0_0 = arith.constant 0 : index
    %0 = vector.load %arg2[%c0, %c0_0] : memref<2x1024xf32, #tpu.memory_space<vmem>>, vector<2x1024xf32>
    %c0_1 = arith.constant 0 : index
    %c0_2 = arith.constant 0 : index
    %1 = vector.load %arg3[%c0_1, %c0_2] : memref<2x1024xf32, #tpu.memory_space<vmem>>, vector<2x1024xf32>
    tpu.vector_store %arg3[%c0_1, %c0_2], %0 {strides = array<i32>} : memref<2x1024xf32, #tpu.memory_space<vmem>>, vector<2x1024xf32>,
    return
  }
  func.func @transform_0(%arg0: i32, %arg1: i32) -> (i32, i32) {
    %c0_i32 = arith.constant 0 : i32
    return %arg0, %arg1 : i32, i32
  }
  func.func @transform_1(%arg0: i32, %arg1: i32) -> (i32, i32) {
    %c0_i32 = arith.constant 0 : i32
    return %arg0, %arg1 : i32, i32
  }
}

</mosaic_0001>

<bundles_post_ra>
// kernel: _flatten_impl.1
= control target key start
LH: loop header
LB: loop body
LE: loop exit
PB: predicated region body
PF: predicated region fallthrough
CT: control target
= control target key end

     0   :  { %s81_s0 = inlined_call_operand.vmem [shape: f32[2,1024], index: 0, kind: input, shape index: {}]   ;;  %s82_s1 = inlined_call_operand.hbm [shape: f32[2,1024], index: 1, kind: output, shape index: {}]  }
   0x1   :  { %v9_v0 = vld [vmem:[%s81_s0] sm:$0xff]  ;;  %v10_v1 = vld [vmem:[%s81_s0 + $0x8] sm:$0xff] }
   0x2   :  { %6 = vsyncpa [#allocation3], 0  ;;  %11 = vst [vmem:[#allocation2] sm:$0xff] %v9_v0  ;;  %s52_s10 = smov [#allocation2]  }
   0x3   :  { %12 = vst [vmem:[#allocation2 + $0x8] sm:$0xff] %v10_v1  ;;  %s19_s11 = sshll.u32 %s52_s10, 4  ;;  %s20_s11 = int_to_ptr.vmem [resolvable:$true] %s19_s11 }
   0x4   :  { %s28_s12 = scalar_lea.vmem %s20_s11, 256  ;;  %p33_p1 = scmp.lt.s32.totalorder %s20_s11, %s20_s11 }
   0x5   :  { %p29_p0 = scmp.ne.s32.totalorder %s20_s11, %s28_s12  ;;  %p34_p2 = scmp.lt.s32.totalorder %s28_s12, %s28_s12 }
   0x7   :  { %p35_p3 = por %p34_p2, %p33_p1 }
   0x9   :  { %p36_p4 = pnand %p35_p3, %p29_p0 }
   0xb   :  { %39 = shalt.err (!%p36_p4)
}
   0xc   :  { %s40_s15 = scalar_lea.hbm %s82_s1, 256 }
   0xd   :  { %p41_p5 = scmp.ne.s32.totalorder %s82_s1, %s40_s15  ;;  %p44_p6 = scmp.lt.u32.totalorder %s40_s15, %s82_s1 }
   0xf   :  { %p46_p7 = pnand %p44_p6, %p41_p5 }
  0x11   :  { %49 = shalt.err (!%p46_p7)
}
  0x12   :  { %22 = dma.vmem_to_hbm [thread:$0]  %s20_s11, 256, %s82_s1, [#allocation3]  }
  0x13   :  { %50 = dma.done.wait [#allocation3], 256  }
  0x14   :  { %51 = vsyncadd [#allocation3], 4294967040 }
  0x15   :  { %26 = vsyncpa [#allocation3], 1 }

</bundles_post_ra>
